<compile_context>
chip_gen: v5e
topology: v5e:2x2
jax: 0.10.0
libtpu: 0.0.40
codegen_flags: <defaults>
</compile_context>

<pallas_src>
import jax
import jax.numpy as jnp
from jax import lax
from jax.experimental import pallas as pl
from jax.experimental.pallas import tpu as pltpu

BN_EPS = 1e-3
LEAKY_SLOPE = 0.1
VMEM_LIMIT = 32 * 1024 * 1024


# --------------------------------------------------------------------------
# Phase 1: 3x3 conv (one K=9C MXU matmul per M tile) + BN partial statistics.
# Grid axis is "arbitrary": csum/csumsq are resident output accumulators.
# --------------------------------------------------------------------------
def _conv3x3_stats_kernel(patch_ref, w1_ref, y1_ref, csum_ref, csumsq_ref):
    # patch_ref : (9*C, TILE_M) bf16   im2col patch tile (rows = (tap, cin))
    # w1_ref    : (C2, 9*C)     bf16   3x3 conv weights (fetch-once)
    # y1_ref    : (C2, TILE_M)  bf16   conv result spilled to HBM for phase 2
    # csum_ref  : (C2, 1)       f32    running per-channel sum   (resident)
    # csumsq_ref: (C2, 1)       f32    running per-channel sum^2 (resident)
    i = pl.program_id(0)

    @pl.when(i == 0)
    def _init():
        csum_ref[...] = jnp.zeros_like(csum_ref)
        csumsq_ref[...] = jnp.zeros_like(csumsq_ref)

    # Conv bias intentionally omitted: training-mode BatchNorm subtracts the
    # per-channel batch mean, which cancels a per-channel pre-BN bias exactly.
    acc = jnp.dot(w1_ref[...], patch_ref[...],
                  preferred_element_type=jnp.float32)          # (C2, TILE_M) f32

    # Zero-padded M columns contribute exactly 0 to both sums (no bias), so no
    # masking is needed; the wrapper divides by the true M.
    csum_ref[...] += jnp.sum(acc, axis=1, keepdims=True)
    csumsq_ref[...] += jnp.sum(acc * acc, axis=1, keepdims=True)

    y1_ref[...] = acc.astype(y1_ref.dtype)                     # bf16 spill


# --------------------------------------------------------------------------
# Phase 2: folded BN scale/shift + LeakyReLU + 1x1 conv.  "parallel" M axis.
# --------------------------------------------------------------------------
def _bn_lrelu_conv1x1_kernel(y1_ref, scale_ref, shift_ref, w2_ref, b2_ref,
                             o_ref):
    # y1_ref   : (C2, TILE_M)      bf16
    # scale/shift : (C2, 1)        f32   folded BN affine
    # w2_ref   : (OUT_pad, C2)     bf16
    # b2_ref   : (OUT_pad, 1)      f32
    # o_ref    : (OUT_pad, TILE_M) f32   lane-dense store
    y = y1_ref[...].astype(jnp.float32) * scale_ref[...] + shift_ref[...]
    y = jnp.maximum(y, LEAKY_SLOPE * y)                        # LeakyReLU(0.1)
    out = jnp.dot(w2_ref[...], y.astype(w2_ref.dtype),
                  preferred_element_type=jnp.float32) + b2_ref[...]
    o_ref[...] = out


@jax.jit
def output_layer_forward(x_nchw, params):
    """Pallas forward. x_nchw: (N, C, H, W) f32 -> (N, 3*(5+classes), H, W)."""
    w1_oihw, b1, gamma, beta, w2_oihw, b2 = params
    del b1  # cancelled exactly by the training-mode BatchNorm mean subtraction
    N, C, H, W = x_nchw.shape
    C2 = w1_oihw.shape[0]
    OUT = w2_oihw.shape[0]
    M = N * H * W

    # Tile the flattened batch*spatial axis.  Multiple of 128 (lane width);
    # small tiles at toy shapes (to exercise the multi-tile reduction path),
    # 512-wide tiles at real YOLO-head sizes.
    tile_m = 128 if M <= 2048 else 512
    n_tiles = pl.cdiv(M, tile_m)
    m_pad = n_tiles * tile_m
    out_pad = ((OUT + 7) // 8) * 8          # 27 -> 32: full-sublane stores

    # ---- glue (fused by XLA under jit): bf16 im2col into kernel layout ------
    # rows = (tap, channel) on sublanes, cols = flattened (n,h,w) on lanes.
    x_bf = x_nchw.astype(jnp.bfloat16)
    xpad = jnp.pad(x_bf, ((0, 0), (0, 0), (1, 1), (1, 1)))     # (N,C,H+2,W+2)
    taps = [xpad[:, :, kh:kh + H, kw:kw + W]
            for kh in range(3) for kw in range(3)]             # 9 x (N,C,H,W)
    patch = jnp.stack(taps, axis=0)                            # (9,N,C,H,W)
    patch = jnp.transpose(patch, (0, 2, 1, 3, 4)).reshape(9 * C, M)
    patch = jnp.pad(patch, ((0, 0), (0, m_pad - M)))           # (9C, m_pad)

    # OIHW (C2,C,3,3) -> (C2, 9C) bf16, column order (kh,kw,c) matches patch.
    w1 = jnp.transpose(w1_oihw, (0, 2, 3, 1)).reshape(C2, 9 * C)
    w1 = w1.astype(jnp.bfloat16)

    # ---- phase 1: 3x3 conv + BN partial sums --------------------------------
    flops1 = 2 * C2 * (9 * C) * m_pad
    bytes1 = (9 * C * m_pad * 2 + C2 * 9 * C * 2       # patch + w1 (bf16)
              + C2 * m_pad * 2 + 2 * C2 * 4)           # y1 spill + stats
    y1, csum, csumsq = pl.pallas_call(
        _conv3x3_stats_kernel,
        grid=(n_tiles,),
        in_specs=[
            pl.BlockSpec((9 * C, tile_m), lambda i: (0, i)),   # patch tile
            pl.BlockSpec((C2, 9 * C), lambda i: (0, 0)),       # w1 (fetch once)
        ],
        out_specs=[
            pl.BlockSpec((C2, tile_m), lambda i: (0, i)),      # y1 tile
            pl.BlockSpec((C2, 1), lambda i: (0, 0)),           # csum (resident)
            pl.BlockSpec((C2, 1), lambda i: (0, 0)),           # csumsq (resident)
        ],
        out_shape=(
            jax.ShapeDtypeStruct((C2, m_pad), jnp.bfloat16),
            jax.ShapeDtypeStruct((C2, 1), jnp.float32),
            jax.ShapeDtypeStruct((C2, 1), jnp.float32),
        ),
        compiler_params=pltpu.CompilerParams(
            dimension_semantics=("arbitrary",),                # cross-tile reduce
            vmem_limit_bytes=VMEM_LIMIT),
        cost_estimate=pl.CostEstimate(flops=flops1, transcendentals=0,
                                      bytes_accessed=bytes1),
    )(patch, w1)

    # ---- fold BN (training-mode batch stats) into one scale/shift (tiny) ----
    inv_m = 1.0 / M
    mean = csum * inv_m                                        # (C2, 1)
    var = csumsq * inv_m - mean * mean
    scale = gamma.reshape(C2, 1) * lax.rsqrt(var + BN_EPS)
    shift = beta.reshape(C2, 1) - mean * scale

    # 1x1 conv weights, OUT padded to a sublane multiple.
    w2 = w2_oihw.reshape(OUT, C2)
    w2 = jnp.pad(w2, ((0, out_pad - OUT), (0, 0))).astype(jnp.bfloat16)
    b2p = jnp.pad(b2.reshape(OUT, 1), ((0, out_pad - OUT), (0, 0)))

    # ---- phase 2: BN apply + LeakyReLU + 1x1 conv ----------------------------
    flops2 = 2 * out_pad * C2 * m_pad + 4 * C2 * m_pad
    bytes2 = (C2 * m_pad * 2 + out_pad * C2 * 2
              + out_pad * m_pad * 4 + (2 * C2 + out_pad) * 4)
    out_flat = pl.pallas_call(
        _bn_lrelu_conv1x1_kernel,
        grid=(n_tiles,),
        in_specs=[
            pl.BlockSpec((C2, tile_m), lambda i: (0, i)),      # y1 tile
            pl.BlockSpec((C2, 1), lambda i: (0, 0)),           # scale
            pl.BlockSpec((C2, 1), lambda i: (0, 0)),           # shift
            pl.BlockSpec((out_pad, C2), lambda i: (0, 0)),     # w2
            pl.BlockSpec((out_pad, 1), lambda i: (0, 0)),      # b2
        ],
        out_specs=pl.BlockSpec((out_pad, tile_m), lambda i: (0, i)),
        out_shape=jax.ShapeDtypeStruct((out_pad, m_pad), jnp.float32),
        compiler_params=pltpu.CompilerParams(
            dimension_semantics=("parallel",),                 # megacore-shardable
            vmem_limit_bytes=VMEM_LIMIT),
        cost_estimate=pl.CostEstimate(flops=flops2, transcendentals=0,
                                      bytes_accessed=bytes2),
    )(y1, scale, shift, w2, b2p)

    # Drop channel / M padding; (OUT, N*H*W) -> (N, OUT, H, W).  Kept in the
    # wrapper so the kernel's store stays lane-dense.
    out_flat = out_flat[:OUT, :M]
    return jnp.transpose(out_flat.reshape(OUT, N, H, W), (1, 0, 2, 3))


def ref_forward(x_nchw, params):
    """Pure-JAX reference matching PyTorch forward semantics (training-mode BN)."""
    w1_oihw, b1, gamma, beta, w2_oihw, b2 = params
    dn = ('NCHW', 'OIHW', 'NCHW')
    y = lax.conv_general_dilated(x_nchw, w1_oihw, (1, 1), ((1, 1), (1, 1)),
                                 dimension_numbers=dn)
    y = y + b1[None, :, None, None]
    mean = jnp.mean(y, axis=(0, 2, 3), keepdims=True)
    var = jnp.mean((y - mean) ** 2, axis=(0, 2, 3), keepdims=True)
    y = (y - mean) * lax.rsqrt(var + BN_EPS)
    y = y * gamma[None, :, None, None] + beta[None, :, None, None]
    y = jnp.where(y > 0, y, LEAKY_SLOPE * y)
    out = lax.conv_general_dilated(y, w2_oihw, (1, 1), 'VALID',
                                   dimension_numbers=dn)
    return out + b2[None, :, None, None]


def init_params(key, input_channels, class_number):
    C = input_channels
    C2 = 2 * C
    OUT = 3 * (5 + class_number)
    k = jax.random.split(key, 6)
    w1 = 0.2 * jax.random.normal(k[0], (C2, C, 3, 3), jnp.float32)    # OIHW
    b1 = 0.1 * jax.random.normal(k[1], (C2,), jnp.float32)
    gamma = 1.0 + 0.1 * jax.random.normal(k[2], (C2,), jnp.float32)
    beta = 0.1 * jax.random.normal(k[3], (C2,), jnp.float32)
    w2 = 0.2 * jax.random.normal(k[4], (OUT, C2, 1, 1), jnp.float32)  # OIHW
    b2 = 0.1 * jax.random.normal(k[5], (OUT,), jnp.float32)
    return (w1, b1, gamma, beta, w2, b2)


if __name__ == "__main__":
    key = jax.random.PRNGKey(0)
    kx, kp = jax.random.split(key)

    N, C, H, W = 2, 4, 16, 16
    class_number = 4                       # OUT = 3 * (5 + 4) = 27
    x = jax.random.normal(kx, (N, C, H, W), jnp.float32)
    params = init_params(kp, C, class_number)

    out = output_layer_forward(x, params)
    out = jax.block_until_ready(out)

    ref = jax.block_until_ready(ref_forward(x, params))
    assert out.shape == ref.shape == (N, 3 * (5 + class_number), H, W)
    assert jnp.allclose(out, ref, rtol=1e-2, atol=1e-2), \
        f"max abs err = {jnp.max(jnp.abs(out - ref))}"

    print("KERNEL_OK")
</pallas_src>

<mosaic_0001>
module attributes {stable_mosaic.version = 11 : i64} {
  func.func @_conv3x3_stats_kernel(%arg0: i32, %arg1: memref<36x128xbf16, #tpu.memory_space<vmem>>, %arg2: memref<8x36xbf16, #tpu.memory_space<vmem>>, %arg3: memref<8x128xbf16, #tpu.memory_space<vmem>>, %arg4: memref<8x1xf32, #tpu.memory_space<vmem>>, %arg5: memref<8x1xf32, #tpu.memory_space<vmem>>) attributes {dimension_semantics = [#tpu.dimension_semantics<arbitrary>], iteration_bounds = array<i64: 4>, scalar_prefetch = 0 : i64, scratch_operands = 0 : i64, tpu.core_type = #tpu.core_type<tc>, window_params = [{transform_indices = @transform_0, window_bounds = array<i64: 36, 128>}, {pipeline_mode = #tpu.pipeline_mode<synchronous>, transform_indices = @transform_1, window_bounds = array<i64: 8, 36>}, {transform_indices = @transform_2, window_bounds = array<i64: 8, 128>}, {pipeline_mode = #tpu.pipeline_mode<synchronous>, transform_indices = @transform_3, window_bounds = array<i64: 8, 1>}, {pipeline_mode = #tpu.pipeline_mode<synchronous>, transform_indices = @transform_4, window_bounds = array<i64: 8, 1>}]} {
    %c0_i32 = arith.constant 0 : i32
    %0 = arith.cmpi eq, %arg0, %c0_i32 : i32
    %1 = arith.extui %0 : i1 to i32
    %c0_i32_0 = arith.constant 0 : i32
    %2 = arith.cmpi ne, %1, %c0_i32_0 : i32
    scf.if %2 {
      %cst_16 = arith.constant 0.000000e+00 : f32
      %19 = vector.broadcast %cst_16 : f32 to vector<8x1xf32>
      %c0_17 = arith.constant 0 : index
      %c0_18 = arith.constant 0 : index
      %20 = vector.load %arg4[%c0_17, %c0_18] : memref<8x1xf32, #tpu.memory_space<vmem>>, vector<8x1xf32>
      tpu.vector_store %arg4[%c0_17, %c0_18], %19 {strides = array<i32>} : memref<8x1xf32, #tpu.memory_space<vmem>>, vector<8x1xf32>,
      %cst_19 = arith.constant 0.000000e+00 : f32
      %21 = vector.broadcast %cst_19 : f32 to vector<8x1xf32>
      %c0_20 = arith.constant 0 : index
      %c0_21 = arith.constant 0 : index
      %22 = vector.load %arg5[%c0_20, %c0_21] : memref<8x1xf32, #tpu.memory_space<vmem>>, vector<8x1xf32>
      tpu.vector_store %arg5[%c0_20, %c0_21], %21 {strides = array<i32>} : memref<8x1xf32, #tpu.memory_space<vmem>>, vector<8x1xf32>,
    } else {
    }
    %c0 = arith.constant 0 : index
    %c0_1 = arith.constant 0 : index
    %3 = vector.load %arg2[%c0, %c0_1] : memref<8x36xbf16, #tpu.memory_space<vmem>>, vector<8x36xbf16>
    %c0_2 = arith.constant 0 : index
    %c0_3 = arith.constant 0 : index
    %4 = vector.load %arg1[%c0_2, %c0_3] : memref<36x128xbf16, #tpu.memory_space<vmem>>, vector<36x128xbf16>
    %cst = arith.constant dense<0.000000e+00> : vector<8x128xf32>
    %5 = tpu.matmul %3, %4, %cst {dimension_numbers = #tpu.dot_dimension_numbers<[1], [0], [0], [1], [0, 0, 1, 1], [], []>} : vector<8x36xbf16>, vector<36x128xbf16>, vector<8x128xf32> -> vector<8x128xf32>
    %c0_4 = arith.constant 0 : index
    %c0_5 = arith.constant 0 : index
    %6 = vector.load %arg4[%c0_4, %c0_5] : memref<8x1xf32, #tpu.memory_space<vmem>>, vector<8x1xf32>
    %cst_6 = arith.constant dense<0.000000e+00> : vector<8xf32>
    %7 = vector.multi_reduction <add>, %5, %cst_6 [1] : vector<8x128xf32> to vector<8xf32>
    %8 = vector.shape_cast %7 : vector<8xf32> to vector<8x1xf32>
    %9 = arith.addf %6, %8 : vector<8x1xf32>
    %c0_7 = arith.constant 0 : index
    %c0_8 = arith.constant 0 : index
    %10 = vector.load %arg4[%c0_7, %c0_8] : memref<8x1xf32, #tpu.memory_space<vmem>>, vector<8x1xf32>
    tpu.vector_store %arg4[%c0_7, %c0_8], %9 {strides = array<i32>} : memref<8x1xf32, #tpu.memory_space<vmem>>, vector<8x1xf32>,
    %c0_9 = arith.constant 0 : index
    %c0_10 = arith.constant 0 : index
    %11 = vector.load %arg5[%c0_9, %c0_10] : memref<8x1xf32, #tpu.memory_space<vmem>>, vector<8x1xf32>
    %12 = arith.mulf %5, %5 : vector<8x128xf32>
    %cst_11 = arith.constant dense<0.000000e+00> : vector<8xf32>
    %13 = vector.multi_reduction <add>, %12, %cst_11 [1] : vector<8x128xf32> to vector<8xf32>
    %14 = vector.shape_cast %13 : vector<8xf32> to vector<8x1xf32>
    %15 = arith.addf %11, %14 : vector<8x1xf32>
    %c0_12 = arith.constant 0 : index
    %c0_13 = arith.constant 0 : index
    %16 = vector.load %arg5[%c0_12, %c0_13] : memref<8x1xf32, #tpu.memory_space<vmem>>, vector<8x1xf32>
    tpu.vector_store %arg5[%c0_12, %c0_13], %15 {strides = array<i32>} : memref<8x1xf32, #tpu.memory_space<vmem>>, vector<8x1xf32>,
    %17 = arith.truncf %5 : vector<8x128xf32> to vector<8x128xbf16>
    %c0_14 = arith.constant 0 : index
    %c0_15 = arith.constant 0 : index
    %18 = vector.load %arg3[%c0_14, %c0_15] : memref<8x128xbf16, #tpu.memory_space<vmem>>, vector<8x128xbf16>
    tpu.vector_store %arg3[%c0_14, %c0_15], %17 {strides = array<i32>} : memref<8x128xbf16, #tpu.memory_space<vmem>>, vector<8x128xbf16>,
    return
  }
  func.func @transform_0(%arg0: i32) -> (i32, i32) {
    %c0_i32 = arith.constant 0 : i32
    %c0_i32_0 = arith.constant 0 : i32
    return %c0_i32, %arg0 : i32, i32
  }
  func.func @transform_1(%arg0: i32) -> (i32, i32) {
    %c0_i32 = arith.constant 0 : i32
    %c0_i32_0 = arith.constant 0 : i32
    %c0_i32_1 = arith.constant 0 : i32
    return %c0_i32, %c0_i32_0 : i32, i32
  }
  func.func @transform_2(%arg0: i32) -> (i32, i32) {
    %c0_i32 = arith.constant 0 : i32
    %c0_i32_0 = arith.constant 0 : i32
    return %c0_i32, %arg0 : i32, i32
  }
  func.func @transform_3(%arg0: i32) -> (i32, i32) {
    %c0_i32 = arith.constant 0 : i32
    %c0_i32_0 = arith.constant 0 : i32
    %c0_i32_1 = arith.constant 0 : i32
    return %c0_i32, %c0_i32_0 : i32, i32
  }
  func.func @transform_4(%arg0: i32) -> (i32, i32) {
    %c0_i32 = arith.constant 0 : i32
    %c0_i32_0 = arith.constant 0 : i32
    %c0_i32_1 = arith.constant 0 : i32
    return %c0_i32, %c0_i32_0 : i32, i32
  }
}

module attributes {stable_mosaic.version = 11 : i64} {
  func.func @_bn_lrelu_conv1x1_kernel(%arg0: i32, %arg1: memref<8x128xbf16, #tpu.memory_space<vmem>>, %arg2: memref<8x1xf32, #tpu.memory_space<vmem>>, %arg3: memref<8x1xf32, #tpu.memory_space<vmem>>, %arg4: memref<32x8xbf16, #tpu.memory_space<vmem>>, %arg5: memref<32x1xf32, #tpu.memory_space<vmem>>, %arg6: memref<32x128xf32, #tpu.memory_space<vmem>>) attributes {dimension_semantics = [#tpu.dimension_semantics<parallel>], iteration_bounds = array<i64: 4>, scalar_prefetch = 0 : i64, scratch_operands = 0 : i64, tpu.core_type = #tpu.core_type<tc>, window_params = [{transform_indices = @transform_0, window_bounds = array<i64: 8, 128>}, {pipeline_mode = #tpu.pipeline_mode<synchronous>, transform_indices = @transform_1, window_bounds = array<i64: 8, 1>}, {pipeline_mode = #tpu.pipeline_mode<synchronous>, transform_indices = @transform_2, window_bounds = array<i64: 8, 1>}, {pipeline_mode = #tpu.pipeline_mode<synchronous>, transform_indices = @transform_3, window_bounds = array<i64: 32, 8>}, {pipeline_mode = #tpu.pipeline_mode<synchronous>, transform_indices = @transform_4, window_bounds = array<i64: 32, 1>}, {transform_indices = @transform_5, window_bounds = array<i64: 32, 128>}]} {
    %c0 = arith.constant 0 : index
    %c0_0 = arith.constant 0 : index
    %0 = vector.load %arg1[%c0, %c0_0] : memref<8x128xbf16, #tpu.memory_space<vmem>>, vector<8x128xbf16>
    %1 = arith.extf %0 : vector<8x128xbf16> to vector<8x128xf32>
    %c0_1 = arith.constant 0 : index
    %c0_2 = arith.constant 0 : index
    %2 = vector.load %arg2[%c0_1, %c0_2] : memref<8x1xf32, #tpu.memory_space<vmem>>, vector<8x1xf32>
    %3 = vector.broadcast %2 : vector<8x1xf32> to vector<8x128xf32>
    %4 = arith.mulf %1, %3 : vector<8x128xf32>
    %c0_3 = arith.constant 0 : index
    %c0_4 = arith.constant 0 : index
    %5 = vector.load %arg3[%c0_3, %c0_4] : memref<8x1xf32, #tpu.memory_space<vmem>>, vector<8x1xf32>
    %6 = vector.broadcast %5 : vector<8x1xf32> to vector<8x128xf32>
    %7 = arith.addf %4, %6 : vector<8x128xf32>
    %cst = arith.constant 1.000000e-01 : f32
    %8 = vector.broadcast %cst : f32 to vector<8x128xf32>
    %9 = arith.mulf %8, %7 : vector<8x128xf32>
    %10 = arith.maximumf %7, %9 : vector<8x128xf32>
    %c0_5 = arith.constant 0 : index
    %c0_6 = arith.constant 0 : index
    %11 = vector.load %arg4[%c0_5, %c0_6] : memref<32x8xbf16, #tpu.memory_space<vmem>>, vector<32x8xbf16>
    %12 = arith.truncf %10 : vector<8x128xf32> to vector<8x128xbf16>
    %cst_7 = arith.constant dense<0.000000e+00> : vector<32x128xf32>
    %13 = tpu.matmul %11, %12, %cst_7 {dimension_numbers = #tpu.dot_dimension_numbers<[1], [0], [0], [1], [0, 0, 1, 1], [], []>} : vector<32x8xbf16>, vector<8x128xbf16>, vector<32x128xf32> -> vector<32x128xf32>
    %c0_8 = arith.constant 0 : index
    %c0_9 = arith.constant 0 : index
    %14 = vector.load %arg5[%c0_8, %c0_9] : memref<32x1xf32, #tpu.memory_space<vmem>>, vector<32x1xf32>
    %15 = vector.broadcast %14 : vector<32x1xf32> to vector<32x128xf32>
    %16 = arith.addf %13, %15 : vector<32x128xf32>
    %c0_10 = arith.constant 0 : index
    %c0_11 = arith.constant 0 : index
    %17 = vector.load %arg6[%c0_10, %c0_11] : memref<32x128xf32, #tpu.memory_space<vmem>>, vector<32x128xf32>
    tpu.vector_store %arg6[%c0_10, %c0_11], %16 {strides = array<i32>} : memref<32x128xf32, #tpu.memory_space<vmem>>, vector<32x128xf32>,
    return
  }
  func.func @transform_0(%arg0: i32) -> (i32, i32) {
    %c0_i32 = arith.constant 0 : i32
    %c0_i32_0 = arith.constant 0 : i32
    return %c0_i32, %arg0 : i32, i32
  }
  func.func @transform_1(%arg0: i32) -> (i32, i32) {
    %c0_i32 = arith.constant 0 : i32
    %c0_i32_0 = arith.constant 0 : i32
    %c0_i32_1 = arith.constant 0 : i32
    return %c0_i32, %c0_i32_0 : i32, i32
  }
  func.func @transform_2(%arg0: i32) -> (i32, i32) {
    %c0_i32 = arith.constant 0 : i32
    %c0_i32_0 = arith.constant 0 : i32
    %c0_i32_1 = arith.constant 0 : i32
    return %c0_i32, %c0_i32_0 : i32, i32
  }
  func.func @transform_3(%arg0: i32) -> (i32, i32) {
    %c0_i32 = arith.constant 0 : i32
    %c0_i32_0 = arith.constant 0 : i32
    %c0_i32_1 = arith.constant 0 : i32
    return %c0_i32, %c0_i32_0 : i32, i32
  }
  func.func @transform_4(%arg0: i32) -> (i32, i32) {
    %c0_i32 = arith.constant 0 : i32
    %c0_i32_0 = arith.constant 0 : i32
    %c0_i32_1 = arith.constant 0 : i32
    return %c0_i32, %c0_i32_0 : i32, i32
  }
  func.func @transform_5(%arg0: i32) -> (i32, i32) {
    %c0_i32 = arith.constant 0 : i32
    %c0_i32_0 = arith.constant 0 : i32
    return %c0_i32, %arg0 : i32, i32
  }
}

</mosaic_0001>

<bundles_post_ra>
// kernel: output_layer_forward.2
= control target key start
LH: loop header
LB: loop body
LE: loop exit
PB: predicated region body
PF: predicated region fallthrough
CT: control target
= control target key end

     0   :  { %s483_s15 = smov 0   ;;  %s485_s16 = smov 0   ;;  %s559_s0 = inlined_call_operand.vmem [shape: bf16[36,512], index: 0, kind: input, shape index: {}]   ;;  %s560_s1 = inlined_call_operand.vmem [shape: bf16[8,36], index: 1, kind: input, shape index: {}]   ;;  %s561_s2 = inlined_call_operand.vmem [shape: bf16[8,512], index: 2, kind: output, shape index: {0}]   ;;  %s562_s3 = inlined_call_operand.vmem [shape: f32[8,1], index: 3, kind: output, shape index: {1}]   ;;  %s563_s4 = inlined_call_operand.vmem [shape: f32[8,1], index: 4, kind: output, shape index: {2}]  }
   0x1   :  { %s487_s17 = smov 0  }
   0x2 LB: > { %s499_s18 = sadd.s32 4294967295, %s455_s17   ;;  %s502_s19 = sadd.s32 1, %s455_s17   ;;  %s455_s17 = sphi %s487_s17, %s566_s17   ;;  %s451_s16 = sphi %s485_s16, %s565_s16   ;;  %s447_s15 = sphi %s483_s15, %s564_s15  }
   0x3   : > { %s19_s20 = ssub.s32 %s455_s17, %s502_s19  ;;  %s22_s21 = sadd.s32 1, %s451_s16 }
   0x4   : > { %p20_p0 = scmp.eq.s32.totalorder %s19_s20, 0  ;;  %p29_p1 = scmp.ne.s32.totalorder %s451_s16, %s447_s15 }
   0x5   : > { %p30_p2 = scmp.eq.s32.totalorder %s455_s17, 0  ;;  %p388_p4 = scmp.ge.s32.totalorder %s455_s17, 4 }
   0x6   : > { %s511_s22 = scalar_select %p20_p0, %s451_s16, %s22_s21  }
   0x7   : > { %p31_p3 = por %p30_p2, %p29_p1  ;;  %147 = sbr.rel (%p388_p4) target bundleno = 21 (0x15), region = 20 }
   0xc   : > { %150 = sbr.rel (!%p31_p3) target bundleno = 21 (0x15), region = 24  ;;  %s152_s23 = sand.u32 (%p31_p3), 1, %s451_s16  }
   0xd   : > { %s389_s24 = sshll.u32 (%p31_p3), %s455_s17, 2  ;;  %s406_s25 = smul.u32 (%p31_p3), 20, %s152_s23 }
   0xe   : > { %s156_s28 = scalar_lea.vmem (%p31_p3), %s559_s0, %s389_s24 }
   0xf   : > { %v173_v0 = vld [vmem:[%s156_s28] sm:$0xf] (%p31_p3)  ;;  %v175_v1 = vld [vmem:[%s156_s28 + $0x10] sm:$0xf] (%p31_p3)  ;;  %s154_s29 = scalar_lea.vmem (%p31_p3), [#allocation2], %s406_s25 }
  0x10   : > { %v177_v2 = vld [vmem:[%s156_s28 + $0x20] sm:$0xf] (%p31_p3)  ;;  %174 = vst [vmem:[%s154_s29] sm:$0xf] (%p31_p3), %v173_v0  ;;  %v179_v3 = vld [vmem:[%s156_s28 + $0x30] sm:$0xf] (%p31_p3) }
  0x11   : > { %176 = vst [vmem:[%s154_s29 + $0x4] sm:$0xf] %v175_v1  ;;  %v181_v4 = vld [vmem:[%s156_s28 + $0x40] sm:$0xf] }
  0x12   : > { %178 = vst [vmem:[%s154_s29 + $0x8] sm:$0xf] %v177_v2 }
  0x13   : > { %180 = vst [vmem:[%s154_s29 + $0xc] sm:$0xf] %v179_v3 }
  0x14   : > { %182 = vst [vmem:[%s154_s29 + $0x10] sm:$0xf] %v181_v4 }
  0x15 PF: > { %p390_p5 = scmp.ge.s32.totalorder %s455_s17, 1  ;;  %p215_p6 = scmp.lt.s32.totalorder %s455_s17, 5 }
  0x17   : > { %p216_p7 = pnand %p390_p5, %p215_p6 }
  0x18   : > { %s222_s30 = sand.u32 (!%p216_p7), 1, %s447_s15   ;;  %p246_p8 = scmp.lt.s32.totalorder (!%p216_p7), %s499_s18, 3 }
  0x19   : > { %219 = sbr.rel (%p216_p7) target bundleno = 309 (0x135), region = 65  ;;  %p392_p9 = scmp.ne.s32.totalorder (!%p216_p7), %s499_s18, 0 }
  0x1a   : > { %s407_s5 = smul.u32 (!%p216_p7), 20, %s222_s30 }
  0x1c   : > { %s224_s11 = scalar_lea.vmem (!%p216_p7), [#allocation2], %s407_s5 }
  0x1e   : > { %s247_s6 = scalar_select %p246_p8, %s499_s18, 3 }
  0x1f   : > { %254 = sbr.rel (%p392_p9) target bundleno = 39 (0x27), region = 73 }
  0x20   : > { %s391_s7 = sshll.u32 %s247_s6, 2 }
  0x21   : > { %s249_s10 = scalar_lea.vmem %s561_s2, %s391_s7 }
  0x24   : > { %vm255_vm0 = vcmask 7168   ;;  %v457_v5 = vmov 0.0  }
  0x25   : > { %256 = vst.msk [vmem:[%s562_s3] sm:$0xff] %vm255_vm0, %v457_v5 }
  0x26   : > { %257 = vst.msk [vmem:[%s563_s4] sm:$0xff] %vm255_vm0, %v457_v5 }
  0x27 PF: > { %v263_v6 = vld [vmem:[%s224_s11 + $0x10] sm:$0x3]  ;;  %vm283_vm1 = vcmask 1041408   ;;  %v405_v10 = vld [vmem:[%s224_s11 + $0x8] sm:$0xff]  ;;  %v404_v11 = vld [vmem:[%s224_s11] sm:$0xff]  ;;  %vm279_vm2 = vcmask 293888  }
  0x28   : > { %v273_v7 = vunpack.c.l.b16 %v263_v6  ;;  %v258_v12 = vld [vmem:[%s560_s1] sm:$0xf]  ;;  %vm304_vm3 = vcmask 7168  }
  0x2a   : > { %v276_v8 = vpack.c.b16 %v273_v7, %v273_v7 }
  0x2c   : > { %v285_v9 = vsel %vm283_vm1, %v276_v8, 0  ;;  %v300_v17 = vld [vmem:[%s562_s3] sm:$0xff] }
  0x2d   : > { %292 = vmatpush.bf16.msra.mxu0 %v285_v9  ;;  %v306_v20 = vld [vmem:[%s563_s4] sm:$0xff] }
  0x31   : > { %293 = vmatpush.bf16.msra.mxu0 %v405_v10 }
  0x35   : > { %294 = vmatpush.bf16.msra.mxu0 %v404_v11 }
  0x38   : > { %401 = vmatmul.msk.bf16.vlgmr.msra.gmra.mxu0 %vm279_vm2, %v258_v12 }
  0xb5   : > { %v296_v13 = vpop.f32.mrf.mxu0 }
  0xb6   : > { %v312_v14 = vpack.c.bf16 %v296_v13, %v296_v13  ;;  %301 = vadd.xlane.f32.xlu0 %v296_v13  ;;  %v307_v15 = vmul.f32 %v296_v13, %v296_v13 }
  0xb8   : > { %313 = vst [vmem:[%s249_s10] sm:$0xf] %v312_v14 }
  0xbd   : > { %v298_v16 = vpop.f32.mrf.mxu0 }
  0xbe   : > { %308 = vadd.xlane.f32.xlu0 %v307_v15 }
 0x129   : > { %v302_v18 = vpop.xlane.xlu0 %301 }
 0x12a   : > { %v303_v19 = vadd.f32 %v302_v18, %v300_v17 }
 0x12c   : > { %305 = vst.msk [vmem:[%s562_s3] sm:$0xff] %vm304_vm3, %v303_v19 }
 0x131   : > { %v309_v21 = vpop.xlane.xlu0 %308 }
 0x132   : > { %v310_v22 = vadd.f32 %v309_v21, %v306_v20 }
 0x134   : > { %311 = vst.msk [vmem:[%s563_s4] sm:$0xff] %vm304_vm3, %v310_v22 }
 0x135 PF: > { %p12_p10 = scmp.ge.s32.totalorder %s502_s19, 6   ;;  %s564_s15 = smov %s451_s16 }
 0x136   : > { %s565_s16 = smov %s511_s22  ;;  %s566_s17 = smov %s502_s19 }
 0x137   :  { %14 = sbr.rel (!%p12_p10) target bundleno = 2 (0x2), region = 124 }

// kernel: output_layer_forward.3
= control target key start
LH: loop header
LB: loop body
LE: loop exit
PB: predicated region body
PF: predicated region fallthrough
CT: control target
= control target key end

     0   :  { %s519_s18 = smov 0   ;;  %s521_s19 = smov 0   ;;  %s594_s0 = inlined_call_operand.vmem [shape: bf16[8,512], index: 0, kind: input, shape index: {}]   ;;  %s595_s1 = inlined_call_operand.vmem [shape: f32[8,1], index: 1, kind: input, shape index: {}]   ;;  %s596_s2 = inlined_call_operand.vmem [shape: f32[8,1], index: 2, kind: input, shape index: {}]   ;;  %s597_s3 = inlined_call_operand.vmem [shape: bf16[32,8], index: 3, kind: input, shape index: {}]   ;;  %s598_s4 = inlined_call_operand.vmem [shape: f32[32,1], index: 4, kind: input, shape index: {}]   ;;  %s599_s5 = inlined_call_operand.vmem [shape: f32[32,512], index: 5, kind: output, shape index: {}]  }
   0x1   :  { %s523_s20 = smov 0  }
   0x2 LB: > { %s532_s21 = sadd.s32 4294967295, %s486_s20   ;;  %s534_s22 = sadd.s32 1, %s486_s20   ;;  %s486_s20 = sphi %s523_s20, %s603_s20   ;;  %s482_s19 = sphi %s521_s19, %s602_s19   ;;  %s478_s18 = sphi %s519_s18, %s601_s18  }
   0x3   : > { %s129_s23 = ssub.s32 %s486_s20, %s534_s22  ;;  %s132_s24 = sadd.s32 1, %s482_s19 }
   0x4   : > { %p130_p0 = scmp.eq.s32.totalorder %s129_s23, 0  ;;  %p142_p1 = scmp.ne.s32.totalorder %s482_s19, %s478_s18 }
   0x5   : > { %p143_p2 = scmp.eq.s32.totalorder %s532_s21, 3  ;;  %p416_p3 = scmp.ge.s32.totalorder %s486_s20, 1 }
   0x6   : > { %s542_s25 = scalar_select %p130_p0, %s482_s19, %s132_s24  }
   0x7   : > { %p544_p4 = por %p143_p2, %p142_p1  ;;  %p186_p5 = scmp.lt.s32.totalorder %s486_s20, 5 }
   0x9   : > { %p187_p6 = pnand %p416_p3, %p186_p5 }
   0xa   : > { %p212_p7 = scmp.lt.s32.totalorder (!%p187_p6), %s532_s21, 3  ;;  %s209_s29 = sand.u32 (!%p187_p6), 1, %s478_s18  }
   0xb   : > { %190 = sbr.rel (%p187_p6) target bundleno = 299 (0x12b), region = 40  ;;  %s417_s30 = sshll.u32 (!%p187_p6), %s209_s29, 5 }
   0xc   : > { %s211_s6 = scalar_lea.vmem (!%p187_p6), [#allocation2], %s417_s30 }
  0x10   : > { %v219_v0 = vld [vmem:[%s595_s1] sm:$0xff]  ;;  %v488_v1 = vmov 0   ;;  %v242_v4 = vld [vmem:[%s598_s4 + $0x10] sm:$0xff]  ;;  %s213_s10 = scalar_select %p212_p7, %s532_s21, 3  ;;  %v241_v5 = vld [vmem:[%s598_s4 + $0x8] sm:$0xff]  ;;  %vm281_vm0 = vcmask 1043456  }
  0x11   : > { %461 = vset.pattern.permute.xlu0 %v488_v1  ;;  %462 = vset.pattern.permute.xlu1 %v488_v1  ;;  %v226_v2 = vld [vmem:[%s596_s2] sm:$0xff]  ;;  %v243_v6 = vld [vmem:[%s598_s4 + $0x18] sm:$0xff]  ;;  %v434_v18 = vld [vmem:[%s597_s3 + $0x8] sm:$0xff]  ;;  %vm274_vm1 = vcmask 64512   ;;  %s430_s18 = sshll.u32 (%p544_p4), %s532_s21, 3 }
  0x12   : > { %222 = vperm.xlu0 %461, %v219_v0   ;;  %463 = vset.pattern.permute.xlu2 %v488_v1  ;;  %v240_v3 = vld [vmem:[%s598_s4] sm:$0xff]  ;;  %s418_s11 = sshll.u32 %s213_s10, 2  ;;  %s316_s9 = scalar_lea.vmem (%p544_p4), %s599_s5, %s430_s18 }
  0x13   : > { %246 = vperm.xlu1 %462, %v240_v3   ;;  %256 = vperm.xlu2 %463, %v242_v4   ;;  %s215_s20 = scalar_lea.vmem %s594_s0, %s418_s11  ;;  %v433_v17 = vld [vmem:[%s597_s3] sm:$0xff] }
  0x14   : > { %v217_v8 = vld [vmem:[%s215_s20] sm:$0xf] }
  0x15   : > { %v218_v9 = vunpack.c.l.bf16 %v217_v8 }
  0x1a   : > { %229 = vperm.xlu0 %461, %v226_v2  }
  0x1b   : > { %251 = vperm.xlu1 %462, %v241_v5   ;;  %261 = vperm.xlu2 %463, %v243_v6  }
  0x6d   : > { %v257_v19 = vpop.permute.xlu2 %256 }
  0x75   : > { %v262_v25 = vpop.permute.xlu2 %261 }
  0x84   : > { %v223_v7 = vpop.permute.xlu0 %222 }
  0x85   : > { %v225_v10 = vmul.f32 %v223_v7, %v218_v9  ;;  %v247_v20 = vpop.permute.xlu1 %246 }
  0x8c   : > { %v230_v11 = vpop.permute.xlu0 %229 }
  0x8d   : > { %v232_v12 = vadd.f32 %v230_v11, %v225_v10  ;;  %v252_v26 = vpop.permute.xlu1 %251 }
  0x8f   : > { %v233_v13 = vmul.f32 0.1, %v232_v12 }
  0x91   : > { %v234_v14 = vmax.f32 %v232_v12, %v233_v13 }
  0x93   : > { %v239_v15 = vpack.c.bf16 %v234_v14, %v234_v14 }
  0x95   : > { %v283_v16 = vsel %vm281_vm0, %v239_v15, 0 }
  0x96   : > { %292 = vmatpush.bf16.msra.mxu0 %v283_v16  ;;  %435 = vmatpush.bf16.msra.mxu1 %v283_v16 }
  0x99   : > { %427 = vmatmul.msk.bf16.vlgmr.msra.gmra.mxu0 %vm274_vm1, %v433_v17  ;;  %428 = vmatmul.msk.bf16.vlgmr.msra.gmra.mxu1 %vm274_vm1, %v434_v18 }
 0x116   : > { %v294_v21 = vpop.f32.mrf.mxu0  ;;  %v299_v22 = vpop.f32.mrf.mxu1 }
 0x117   : > { %v295_v23 = vadd.f32 %v294_v21, %v247_v20  ;;  %v300_v24 = vadd.f32 %v299_v22, %v257_v19 }
 0x119   : > { %304 = vst [vmem:[%s211_s6] sm:$0xff] %v295_v23 }
 0x11a   : > { %306 = vst [vmem:[%s211_s6 + $0x10] sm:$0xff] %v300_v24 }
 0x11e   : > { %v296_v27 = vpop.f32.mrf.mxu0  ;;  %v301_v28 = vpop.f32.mrf.mxu1  ;;  %314 = sbr.rel (!%p544_p4) target bundleno = 299 (0x12b), region = 44 }
 0x11f   : > { %v297_v29 = vadd.f32 %v296_v27, %v252_v26  ;;  %v302_v30 = vadd.f32 %v301_v28, %v262_v25 }
 0x120   : > { %v351_v31 = vld [vmem:[%s211_s6] sm:$0xff] (%p544_p4) }
 0x121   : > { %305 = vst [vmem:[%s211_s6 + $0x8] sm:$0xff] %v297_v29  ;;  %v355_v33 = vld [vmem:[%s211_s6 + $0x10] sm:$0xff] (%p544_p4) }
 0x122   : > { %307 = vst [vmem:[%s211_s6 + $0x18] sm:$0xff] %v302_v30 }
 0x123   : > { %352 = vst [vmem:[%s316_s9] sm:$0xff] %v351_v31 }
 0x124   : > { %356 = vst [vmem:[%s316_s9 + $0x40] sm:$0xff] %v355_v33 }
 0x128   : > { %v353_v32 = vld [vmem:[%s211_s6 + $0x8] sm:$0xff] }
 0x129   : > { %v357_v34 = vld [vmem:[%s211_s6 + $0x18] sm:$0xff]  ;;  %354 = vst [vmem:[%s316_s9 + $0x20] sm:$0xff] %v353_v32 }
 0x12a   : > { %358 = vst [vmem:[%s316_s9 + $0x60] sm:$0xff] %v357_v34 }
 0x12b PF: > { %p12_p8 = scmp.ge.s32.totalorder %s534_s22, 6   ;;  %s601_s18 = smov %s482_s19 }
 0x12c   : > { %s602_s19 = smov %s542_s25  ;;  %s603_s20 = smov %s534_s22 }
 0x12d   :  { %14 = sbr.rel (!%p12_p8) target bundleno = 2 (0x2), region = 108 }

</bundles_post_ra>
